<compile_context>
chip_gen: v7x
topology: tpu7x:2x2x1
jax: 0.10.0
libtpu: 0.0.40
codegen_flags: <defaults>
</compile_context>

<pallas_src>
import functools
import math

import jax
import jax.numpy as jnp
from jax.experimental import pallas as pl
from jax.experimental.pallas import tpu as pltpu


def _gauss_noise_kernel(x_ref, u_ref, o_ref, *, mean, std, half):
    """One (block_rows, lanes) tile: Box-Muller noise + add + clamp.

    u_ref holds uniforms in [0, 1).  The left half drives the radius, the
    right half the angle; both Box-Muller outputs (cos and sin) are used so
    each uniform pair yields two normals (halves log/sqrt/trig work).
    """
    scale = jnp.float32(std)
    shift = jnp.float32(mean)

    u1 = u_ref[:, :half]                     # uniform in [0, 1)
    u2 = u_ref[:, half:]
    # 1 - u1 is in (0, 1]  ->  log is finite, normal tail is not truncated.
    r = jnp.sqrt(jnp.float32(-2.0) * jnp.log(jnp.float32(1.0) - u1))
    theta = jnp.float32(2.0 * math.pi) * u2

    z_cos = r * jnp.cos(theta)
    z_sin = r * jnp.sin(theta)

    o_ref[:, :half] = jnp.clip(x_ref[:, :half] + z_cos * scale + shift, 0.0, 1.0)
    o_ref[:, half:] = jnp.clip(x_ref[:, half:] + z_sin * scale + shift, 0.0, 1.0)


def add_gaussian_noise(img, key, *, mean=0.0, std=0.01, lanes=1024,
                       max_block_rows=256):
    """Add clamped Gaussian noise to a float image (any shape), values in [0,1]."""
    orig_shape = img.shape
    x = img.astype(jnp.float32).reshape(-1)
    n = x.shape[0]

    # Lane-dense slab: (rows, lanes) with lanes a large multiple of 128.
    rows = pl.cdiv(n, lanes)
    rows = ((rows + 7) // 8) * 8                      # sublane multiple
    block_rows = min(max_block_rows, rows)            # multiple of 8 by construction
    rows = ((rows + block_rows - 1) // block_rows) * block_rows
    total = rows * lanes
    half = lanes // 2                                  # 512 -> lane-aligned split

    x_pad = jnp.pad(x, (0, total - n)).reshape(rows, lanes)
    # Per-element independent uniforms -> tiling cannot repeat noise blocks.
    u = jax.random.uniform(key, (rows, lanes), dtype=jnp.float32)

    grid = (rows // block_rows,)
    kernel = functools.partial(_gauss_noise_kernel,
                               mean=float(mean), std=float(std), half=half)

    out = pl.pallas_call(
        kernel,
        out_shape=jax.ShapeDtypeStruct((rows, lanes), jnp.float32),
        grid=grid,
        in_specs=[
            pl.BlockSpec((block_rows, lanes), lambda i: (i, 0)),
            pl.BlockSpec((block_rows, lanes), lambda i: (i, 0)),
        ],
        out_specs=pl.BlockSpec((block_rows, lanes), lambda i: (i, 0)),
        compiler_params=pltpu.CompilerParams(
            dimension_semantics=("parallel",)),
        cost_estimate=pl.CostEstimate(
            flops=8 * total,
            transcendentals=2 * total,
            bytes_accessed=3 * total * 4),
    )(x_pad, u)

    return out.reshape(-1)[:n].reshape(orig_shape)


def add_gaussian_noise_transform(img, key, *, mean=0.0, std=0.01, p=0.5):
    """Full transform: host-level Bernoulli(p) gate + noise kernel.

    Mirrors the PyTorch module's `if random.random() < self.p:` — the gate is
    decided on the host, so the (1-p) pass-through case never touches the TPU.
    """
    k_gate, k_noise = jax.random.split(key)
    if bool(jax.random.uniform(k_gate, ()) < p):
        return add_gaussian_noise(img, k_noise, mean=mean, std=std)
    # TODO(synk): T.ToTensor()/T.ToPILImage() PIL conversions are host-side and
    # out of scope; the kernel operates on the float CHW [0,1] representation.
    return img


if __name__ == "__main__":
    key = jax.random.PRNGKey(0)
    k_img, k_noise, k_gate = jax.random.split(key, 3)

    # Small image: 3 channels, 16x16, values in [0, 1] (T.ToTensor convention).
    C, H, W = 3, 16, 16
    img = jax.random.uniform(k_img, (C, H, W), dtype=jnp.float32)

    # Hot path: noise applied.
    out = jax.block_until_ready(add_gaussian_noise(img, k_noise, mean=0.0, std=0.01))
    assert out.shape == img.shape and out.dtype == jnp.float32
    assert float(out.min()) >= 0.0 and float(out.max()) <= 1.0
    diff = out - img
    assert float(jnp.max(jnp.abs(diff))) > 0.0      # noise actually added
    assert float(jnp.max(jnp.abs(diff))) < 0.1      # ...and it is small (std=0.01)

    # Larger image with a small block size to exercise the multi-step pipelined grid.
    big = jax.random.uniform(k_img, (3, 224, 224), dtype=jnp.float32)
    out_big = jax.block_until_ready(
        add_gaussian_noise(big, k_noise, mean=0.0, std=0.01, max_block_rows=64))
    assert out_big.shape == big.shape
    assert float(out_big.min()) >= 0.0 and float(out_big.max()) <= 1.0

    # Full transform: forced-apply branch and free pass-through branch.
    out_apply = jax.block_until_ready(add_gaussian_noise_transform(img, k_gate, p=1.0))
    assert out_apply.shape == img.shape
    out_pass = add_gaussian_noise_transform(img, k_gate, p=0.0)
    assert out_pass is img                          # pass-through is a host no-op

    print("KERNEL_OK")
</pallas_src>

<mosaic_0001>
module attributes {stable_mosaic.version = 11 : i64} {
  func.func @_gauss_noise_kernel(%arg0: i32, %arg1: memref<8x1024xf32, #tpu.memory_space<vmem>>, %arg2: memref<8x1024xf32, #tpu.memory_space<vmem>>, %arg3: memref<8x1024xf32, #tpu.memory_space<vmem>>) attributes {dimension_semantics = [#tpu.dimension_semantics<parallel>], iteration_bounds = array<i64: 1>, scalar_prefetch = 0 : i64, scratch_operands = 0 : i64, tpu.core_type = #tpu.core_type<tc>, window_params = [{transform_indices = @transform_0, window_bounds = array<i64: 8, 1024>}, {transform_indices = @transform_1, window_bounds = array<i64: 8, 1024>}, {transform_indices = @transform_2, window_bounds = array<i64: 8, 1024>}]} {
    %c0 = arith.constant 0 : index
    %c0_0 = arith.constant 0 : index
    %0 = vector.load %arg2[%c0, %c0_0] : memref<8x1024xf32, #tpu.memory_space<vmem>>, vector<8x512xf32>
    %c0_1 = arith.constant 0 : index
    %c512 = arith.constant 512 : index
    %1 = vector.load %arg2[%c0_1, %c512] : memref<8x1024xf32, #tpu.memory_space<vmem>>, vector<8x512xf32>
    %cst = arith.constant 1.000000e+00 : f32
    %2 = vector.broadcast %cst : f32 to vector<8x512xf32>
    %3 = arith.subf %2, %0 : vector<8x512xf32>
    %4 = math.log %3 : vector<8x512xf32>
    %cst_2 = arith.constant -2.000000e+00 : f32
    %5 = vector.broadcast %cst_2 : f32 to vector<8x512xf32>
    %6 = arith.mulf %5, %4 : vector<8x512xf32>
    %7 = math.sqrt %6 : vector<8x512xf32>
    %cst_3 = arith.constant 6.28318548 : f32
    %8 = vector.broadcast %cst_3 : f32 to vector<8x512xf32>
    %9 = arith.mulf %8, %1 : vector<8x512xf32>
    %10 = math.cos %9 : vector<8x512xf32>
    %11 = arith.mulf %7, %10 : vector<8x512xf32>
    %12 = math.sin %9 : vector<8x512xf32>
    %13 = arith.mulf %7, %12 : vector<8x512xf32>
    %c0_4 = arith.constant 0 : index
    %c0_5 = arith.constant 0 : index
    %14 = vector.load %arg1[%c0_4, %c0_5] : memref<8x1024xf32, #tpu.memory_space<vmem>>, vector<8x512xf32>
    %cst_6 = arith.constant 0.00999999977 : f32
    %15 = vector.broadcast %cst_6 : f32 to vector<8x512xf32>
    %16 = arith.mulf %11, %15 : vector<8x512xf32>
    %17 = arith.addf %14, %16 : vector<8x512xf32>
    %cst_7 = arith.constant 0.000000e+00 : f32
    %18 = vector.broadcast %cst_7 : f32 to vector<8x512xf32>
    %19 = arith.addf %17, %18 : vector<8x512xf32>
    %cst_8 = arith.constant 0.000000e+00 : f32
    %cst_9 = arith.constant 1.000000e+00 : f32
    %20 = vector.broadcast %cst_8 : f32 to vector<8x512xf32>
    %21 = arith.maximumf %20, %19 : vector<8x512xf32>
    %22 = vector.broadcast %cst_9 : f32 to vector<8x512xf32>
    %23 = arith.minimumf %22, %21 : vector<8x512xf32>
    %c0_10 = arith.constant 0 : index
    %c0_11 = arith.constant 0 : index
    %24 = vector.load %arg3[%c0_10, %c0_11] : memref<8x1024xf32, #tpu.memory_space<vmem>>, vector<8x512xf32>
    tpu.vector_store %arg3[%c0_10, %c0_11], %23 {strides = array<i32>} : memref<8x1024xf32, #tpu.memory_space<vmem>>, vector<8x512xf32>,
    %c0_12 = arith.constant 0 : index
    %c512_13 = arith.constant 512 : index
    %25 = vector.load %arg1[%c0_12, %c512_13] : memref<8x1024xf32, #tpu.memory_space<vmem>>, vector<8x512xf32>
    %cst_14 = arith.constant 0.00999999977 : f32
    %26 = vector.broadcast %cst_14 : f32 to vector<8x512xf32>
    %27 = arith.mulf %13, %26 : vector<8x512xf32>
    %28 = arith.addf %25, %27 : vector<8x512xf32>
    %cst_15 = arith.constant 0.000000e+00 : f32
    %29 = vector.broadcast %cst_15 : f32 to vector<8x512xf32>
    %30 = arith.addf %28, %29 : vector<8x512xf32>
    %cst_16 = arith.constant 0.000000e+00 : f32
    %cst_17 = arith.constant 1.000000e+00 : f32
    %31 = vector.broadcast %cst_16 : f32 to vector<8x512xf32>
    %32 = arith.maximumf %31, %30 : vector<8x512xf32>
    %33 = vector.broadcast %cst_17 : f32 to vector<8x512xf32>
    %34 = arith.minimumf %33, %32 : vector<8x512xf32>
    %c0_18 = arith.constant 0 : index
    %c512_19 = arith.constant 512 : index
    %35 = vector.load %arg3[%c0_18, %c512_19] : memref<8x1024xf32, #tpu.memory_space<vmem>>, vector<8x512xf32>
    tpu.vector_store %arg3[%c0_18, %c512_19], %34 {strides = array<i32>} : memref<8x1024xf32, #tpu.memory_space<vmem>>, vector<8x512xf32>,
    return
  }
  func.func @transform_0(%arg0: i32) -> (i32, i32) {
    %c0_i32 = arith.constant 0 : i32
    %c0_i32_0 = arith.constant 0 : i32
    return %arg0, %c0_i32 : i32, i32
  }
  func.func @transform_1(%arg0: i32) -> (i32, i32) {
    %c0_i32 = arith.constant 0 : i32
    %c0_i32_0 = arith.constant 0 : i32
    return %arg0, %c0_i32 : i32, i32
  }
  func.func @transform_2(%arg0: i32) -> (i32, i32) {
    %c0_i32 = arith.constant 0 : i32
    %c0_i32_0 = arith.constant 0 : i32
    return %arg0, %c0_i32 : i32, i32
  }
}

</mosaic_0001>

<bundles_post_ra>
// kernel: tpu_custom_call.1
= control target key start
LH: loop header
LB: loop body
LE: loop exit
PB: predicated region body
PF: predicated region fallthrough
CT: control target
= control target key end

     0   :  { %7 = vsyncpa [#allocation3], 0  ;;  %s1623_s0 = inlined_call_operand.hbm [shape: f32[8,1024], index: 0, kind: input, shape index: {}]   ;;  %s1624_s1 = inlined_call_operand.hbm [shape: f32[8,1024], index: 1, kind: input, shape index: {}]   ;;  %s1625_s2 = inlined_call_operand.hbm [shape: f32[8,1024], index: 2, kind: output, shape index: {}]  }
   0x1   :  { %8 = vsyncpa [#allocation6], 0 }
   0x2   :  { %9 = vsyncpa [#allocation4], 0  ;;  %s1161_s9 = smov [#allocation2]   ;;  %s1162_s11 = smov [#allocation5]  }
   0x3   :  { %s16_s10 = sshll.u32 %s1161_s9, 4  ;;  %s26_s12 = sshll.u32 %s1162_s11, 4  ;;  %s17_s10 = int_to_ptr.vmem [resolvable:$true] %s16_s10  ;;  %s27_s12 = int_to_ptr.vmem [resolvable:$true] %s26_s12 }
   0x4   :  { %s1089_s15 = scalar_lea.hbm %s1623_s0, 1024 }
   0x5   :  { %p1090_p0 = scmp.ne.s32.totalorder %s1623_s0, %s1089_s15  ;;  %p1093_p1 = scmp.lt.u32.totalorder %s1089_s15, %s1623_s0 }
   0x7   :  { %p1095_p2 = pnand %p1093_p1, %p1090_p0 }
   0x9   :  { %1098 = shalt.err (!%p1095_p2)
}
   0xa   :  { %s1099_s20 = scalar_lea.vmem %s17_s10, 1024  ;;  %p1104_p4 = scmp.lt.s32.totalorder %s17_s10, %s17_s10 }
   0xb   :  { %p1100_p3 = scmp.ne.s32.totalorder %s17_s10, %s1099_s20  ;;  %p1105_p5 = scmp.lt.s32.totalorder %s1099_s20, %s1099_s20 }
   0xd   :  { %p1106_p6 = por %p1105_p5, %p1104_p4 }
   0xf   :  { %p1107_p7 = pnand %p1106_p6, %p1100_p3 }
  0x11   :  { %1110 = shalt.err (!%p1107_p7)
}
  0x12   :  { %19 = dma.hbm_to_vmem [thread:$0]  %s1623_s0, 1024, %s17_s10, [#allocation3]  }
  0x13   :  { %s1111_s25 = scalar_lea.hbm %s1624_s1, 1024 }
  0x14   :  { %p1112_p8 = scmp.ne.s32.totalorder %s1624_s1, %s1111_s25  ;;  %p1115_p9 = scmp.lt.u32.totalorder %s1111_s25, %s1624_s1 }
  0x16   :  { %p1117_p10 = pnand %p1115_p9, %p1112_p8 }
  0x18   :  { %1120 = shalt.err (!%p1117_p10)
}
  0x19   :  { %s1121_s30 = scalar_lea.vmem %s27_s12, 1024  ;;  %p1126_p12 = scmp.lt.s32.totalorder %s27_s12, %s27_s12 }
  0x1a   :  { %p1122_p11 = scmp.ne.s32.totalorder %s27_s12, %s1121_s30  ;;  %p1127_p13 = scmp.lt.s32.totalorder %s1121_s30, %s1121_s30 }
  0x1c   :  { %p1128_p0 = por %p1127_p13, %p1126_p12 }
  0x1e   :  { %p1129_p1 = pnand %p1128_p0, %p1122_p11 }
  0x20   :  { %1132 = shalt.err (!%p1129_p1)
}
  0x21   :  { %29 = dma.hbm_to_vmem [thread:$0]  %s1624_s1, 1024, %s27_s12, [#allocation6]  }
  0x22   :  { %1155 = dma.done.wait [#allocation3], 1024  }
  0x23   :  { %1156 = vsyncadd [#allocation3], 4294966272 }
  0x24   :  { %1157 = dma.done.wait [#allocation6], 1024  }
  0x25   :  { %1158 = vsyncadd [#allocation6], 4294966272  ;;  %v40_v0 = vld [vmem:[#allocation5 + $0x20] sm:$0xff]  ;;  %v41_v2 = vld [vmem:[#allocation5 + $0x28] sm:$0xff]  ;;  %v1163_v23 = vmov 683565275  }
  0x26   :  { %v1209_v1 = vmul.f32 6.2831855, %v40_v0  ;;  %v1211_v3 = vmul.f32 6.2831855, %v41_v2  ;;  %v36_v7 = vld [vmem:[#allocation5] sm:$0xff]  ;;  %v37_v9 = vld [vmem:[#allocation5 + $0x8] sm:$0xff] }
  0x27   :  { %v44_v12 = vsub.f32 1.0, %v36_v7  ;;  %v45_v15 = vsub.f32 1.0, %v37_v9  ;;  %v1164_v25 = vmov 2475754826   ;;  %v1165_v27 = vmov 2131351028  }
  0x28   :  { %v95_v4 = vand.u32 2139095040, %v1209_v1  ;;  %v198_v6 = vand.u32 2139095040, %v1211_v3  ;;  %v92_v11 = vand.u32 2147483647, %v1209_v1  ;;  %v195_v18 = vand.u32 2147483647, %v1211_v3 }
  0x29   :  { %1057 = vlog2.f32 %v44_v12  ;;  %v38_v29 = vld [vmem:[#allocation5 + $0x10] sm:$0xff]  ;;  %v1166_v34 = vmov 2102212464   ;;  %v1167_v39 = vmov 920167782   ;;  %vm94_vm14 = vcmp.lt.s32.totalorder %v1209_v1, 0 }
  0x2a   :  { %v96_v5 = vshrl.u32 %v95_v4, 23  ;;  %v199_v10 = vshrl.u32 %v198_v6, 23  ;;  %v99_v16 = vand.u32 8388607, %v92_v11  ;;  %1059 = vlog2.f32 %v45_v15  ;;  %v42_v37 = vld [vmem:[#allocation5 + $0x30] sm:$0xff]  ;;  %s1169_s1 = smov [#allocation7]  }
  0x2b   :  { %v1224_v31 = vand.u32 8388607, %v195_v18  ;;  %v46_v41 = vsub.f32 1.0, %v38_v29  ;;  %v1168_v46 = vmov 1326507024   ;;  %s990_s4 = sshll.u32 %s1169_s1, 4  ;;  %s991_s4 = int_to_ptr.vmem [resolvable:$true] %s990_s4 }
  0x2c   :  { %v1000_v8 = vadd.s32 4294967169, %v96_v5  ;;  %v1004_v14 = vadd.s32 4294967169, %v199_v10  ;;  %v100_v30 = vor.u32 8388608, %v99_v16  ;;  %v1235_v49 = vmul.f32 6.2831855, %v42_v37  ;;  %s1133_s5 = scalar_lea.vmem %s991_s4, 1024  ;;  %p1138_p3 = scmp.lt.s32.totalorder %s991_s4, %s991_s4 }
  0x2d   :  { %v203_v0 = vor.u32 8388608, %v1224_v31  ;;  %1061 = vlog2.f32 %v46_v41  ;;  %vm1340_vm15 = vcmp.le.f32.partialorder %v92_v11, 0.7853982  ;;  %p1134_p2 = scmp.ne.s32.totalorder %s991_s4, %s1133_s5  ;;  %p1139_p4 = scmp.lt.s32.totalorder %s1133_s5, %s1133_s5 }
  0x2e   :  { %v102_v13 = vadd.s32 1, %v1000_v8  ;;  %v205_v19 = vadd.s32 1, %v1004_v14  ;;  %v140_v52 = vshll.u32 %v100_v30, 8  ;;  %v301_v6 = vand.u32 2139095040, %v1235_v49 }
  0x2f   :  { %p1140_p5 = por %p1139_p4, %p1138_p3 }
  0x30   :  { %vm103_vm0 = vcmp.gt.s32.totalorder %v102_v13, 0  ;;  %vm206_vm1 = vcmp.gt.s32.totalorder %v205_v19, 0  ;;  %v302_v31 = vshrl.u32 %v301_v6, 23 }
  0x31   :  { %v104_v17 = vsel %vm103_vm0, %v102_v13, 0  ;;  %v207_v48 = vsel %vm206_vm1, %v205_v19, 0  ;;  %p1141_p6 = pnand %p1140_p5, %p1134_p2 }
  0x32   :  { %v106_v20 = vand.u32 31, %v104_v17  ;;  %v105_v21 = vshrl.u32 %v104_v17, 5  ;;  %v209_v60 = vand.u32 31, %v207_v48  ;;  %v208_v17 = vshrl.u32 %v207_v48, 5 }
  0x33   :  { %v1058_v56 = vpop.eup %1057 }
  0x34   :  { %v107_v22 = vsub.s32 32, %v106_v20  ;;  %v109_v24 = vshll.u32 %v1163_v23, %v106_v20  ;;  %v112_v26 = vshll.u32 %v1164_v25, %v106_v20  ;;  %v115_v28 = vshll.u32 %v1165_v27, %v106_v20  ;;  %v1060_v61 = vpop.eup %1059 }
  0x35   :  { %v118_v36 = vshll.u32 %v1166_v34, %v106_v20  ;;  %v121_v40 = vshll.u32 %v1167_v39, %v106_v20  ;;  %vm124_vm2 = vcmp.lt.s32.totalorder %v105_v21, 1  ;;  %vm127_vm3 = vcmp.lt.s32.totalorder %v105_v21, 4 }
  0x36   :  { %v110_v32 = vshrl.u32 %v1164_v25, %v107_v22  ;;  %v113_v33 = vshrl.u32 %v1165_v27, %v107_v22  ;;  %v116_v35 = vshrl.u32 %v1166_v34, %v107_v22  ;;  %v108_v38 = vshrl.u32 %v1163_v23, %v107_v22 }
  0x37   :  { %v119_v45 = vshrl.u32 %v1167_v39, %v107_v22  ;;  %v122_v47 = vshrl.u32 %v1168_v46, %v107_v22  ;;  %vm126_vm4 = vcmp.lt.s32.totalorder %v105_v21, 3  ;;  %vm125_vm5 = vcmp.lt.s32.totalorder %v105_v21, 2 }
  0x38   :  { %v111_v42 = vor.u32 %v110_v32, %v109_v24  ;;  %v114_v43 = vor.u32 %v113_v33, %v112_v26  ;;  %v117_v44 = vor.u32 %v116_v35, %v115_v28  ;;  %v210_v5 = vsub.s32 32, %v209_v60 }
  0x39   :  { %v120_v50 = vor.u32 %v119_v45, %v118_v36  ;;  %v123_v53 = vor.u32 %v122_v47, %v121_v40  ;;  %v49_v12 = vmul.f32 0.6931472, %v1058_v56  ;;  %v212_v15 = vshll.u32 %v1163_v23, %v209_v60 }
  0x3a   :  { %v129_v51 = vsel %vm127_vm3, %v117_v44, 2102212464  ;;  %v128_v54 = vsel %vm124_vm2, %v108_v38, %v111_v42  ;;  %v132_v55 = vsel %vm124_vm2, %v111_v42, %v114_v43  ;;  %v136_v59 = vsel %vm124_vm2, %v114_v43, %v117_v44 }
  0x3b   :  { %v130_v57 = vsel %vm126_vm4, %v114_v43, %v129_v51  ;;  %v133_v58 = vsel %vm127_vm3, %v120_v50, 920167782  ;;  %v137_v63 = vsel %vm127_vm3, %v123_v53, 1326507024  ;;  %v51_v16 = vmul.f32 0.6931472, %v1060_v61 }
  0x3c   :  { %v134_v62 = vsel %vm126_vm4, %v117_v44, %v133_v58  ;;  %v138_v4 = vsel %vm126_vm4, %v120_v50, %v137_v63  ;;  %v131_v7 = vsel %vm125_vm5, %v128_v54, %v130_v57  ;;  %v213_v19 = vshrl.u32 %v1164_v25, %v210_v5  ;;  %v1062_v44 = vpop.eup %1061 }
  0x3d   :  { %v135_v2 = vsel %vm125_vm5, %v132_v55, %v134_v62  ;;  %v139_v8 = vsel %vm125_vm5, %v136_v59, %v138_v4  ;;  %v215_v20 = vshll.u32 %v1164_v25, %v209_v60  ;;  %v147_v22 = vmul.u32 %v140_v52, %v131_v7 }
  0x3e   :  { %v1251_v9 = vmul.u32.u64.low %v140_v52, %v135_v2  ;;  %v1252_v10 = vmul.u32.u64.high %v140_v52, %v135_v2, %v1251_v9  ;;  %v1255_v13 = vmul.u32.u64.low %v140_v52, %v139_v8  ;;  %v1256_v14 = vmul.u32.u64.high %v140_v52, %v139_v8, %v1255_v13 }
  0x3f   :  { %v216_v21 = vshrl.u32 %v1165_v27, %v210_v5  ;;  %v218_v24 = vshll.u32 %v1165_v27, %v209_v60  ;;  %v219_v26 = vshrl.u32 %v1166_v34, %v210_v5  ;;  %v221_v29 = vshll.u32 %v1166_v34, %v209_v60 }
  0x40   :  { %v150_v28 = vadd.s32 1, %v1252_v10  ;;  %v222_v30 = vshrl.u32 %v1167_v39, %v210_v5  ;;  %v1267_v32 = vmul.f32 -2.0, %v49_v12  ;;  %vm149_vm6 = vc.u32 %v1256_v14, %v1251_v9 }
  0x41   :  { %v214_v33 = vor.u32 %v213_v19, %v212_v15  ;;  %v217_v35 = vor.u32 %v216_v21, %v215_v20  ;;  %v1272_v37 = vmul.f32 -2.0, %v51_v16  ;;  %v220_v38 = vor.u32 %v219_v26, %v218_v24  ;;  %v43_v20 = vld [vmem:[#allocation5 + $0x38] sm:$0xff] }
  0x42   :  { %v151_v36 = vsel %vm149_vm6, %v150_v28, %v1252_v10  ;;  %v223_v40 = vor.u32 %v222_v30, %v221_v29  ;;  %v224_v42 = vshll.u32 %v1167_v39, %v209_v60  ;;  %v225_v43 = vshrl.u32 %v1168_v46, %v210_v5 }
  0x43   :  { %v152_v41 = vadd.s32 %v151_v36, %v147_v22  ;;  %vm227_vm7 = vcmp.lt.s32.totalorder %v208_v17, 1  ;;  %v211_v45 = vshrl.u32 %v1163_v23, %v210_v5  ;;  %vm228_vm8 = vcmp.lt.s32.totalorder %v208_v17, 2 }
  0x44   :  { %vm229_vm9 = vcmp.lt.s32.totalorder %v208_v17, 3  ;;  %vm230_vm10 = vcmp.lt.s32.totalorder %v208_v17, 4  ;;  %v226_v48 = vor.u32 %v225_v43, %v224_v42  ;;  %v235_v51 = vsel %vm227_vm7, %v214_v33, %v217_v35 }
  0x45   :  { %v153_v47 = vadd.s32 536870912, %v152_v41  ;;  %v232_v50 = vsel %vm230_vm10, %v220_v38, 2102212464  ;;  %1063 = vrsqrt.f32 %v1267_v32  ;;  %v236_v52 = vsel %vm230_vm10, %v223_v40, 920167782 }
  0x46   :  { %v243_v53 = vshll.u32 %v203_v0, 8  ;;  %1065 = vrsqrt.f32 %v1272_v37  ;;  %v237_v55 = vsel %vm229_vm9, %v220_v38, %v236_v52  ;;  %v239_v56 = vsel %vm227_vm7, %v217_v35, %v220_v38 }
  0x47   :  { %v1279_v54 = vshrl.u32 %v153_v47, 30  ;;  %v231_v57 = vsel %vm227_vm7, %v211_v45, %v214_v33  ;;  %v233_v58 = vsel %vm229_vm9, %v217_v35, %v232_v50  ;;  %v238_v59 = vsel %vm228_vm8, %v235_v51, %v237_v55 }
  0x48   :  { %v240_v60 = vsel %vm230_vm10, %v226_v48, 1326507024  ;;  %v1008_v63 = vadd.s32 4294967169, %v302_v31  ;;  %v1290_v2 = vmul.u32.u64.low %v243_v53, %v238_v59  ;;  %v1291_v4 = vmul.u32.u64.high %v243_v53, %v238_v59, %v1290_v2 }
  0x49   :  { %v155_v61 = vshll.u32 %v1279_v54, 30  ;;  %v241_v62 = vsel %vm229_vm9, %v223_v40, %v240_v60  ;;  %v298_v5 = vand.u32 2147483647, %v1235_v49  ;;  %v234_v7 = vsel %vm228_vm8, %v231_v57, %v233_v58 }
  0x4a   :  { %v242_v0 = vsel %vm228_vm8, %v239_v56, %v241_v62  ;;  %v308_v13 = vadd.s32 1, %v1008_v63  ;;  %v250_v15 = vmul.u32 %v243_v53, %v234_v7  ;;  %v253_v16 = vadd.s32 1, %v1291_v4 }
  0x4b   :  { %v156_v6 = vsub.s32 %v152_v41, %v155_v61  ;;  %v1295_v8 = vmul.u32.u64.low %v243_v53, %v242_v0  ;;  %v1296_v10 = vmul.u32.u64.high %v243_v53, %v242_v0, %v1295_v8  ;;  %v305_v19 = vand.u32 8388607, %v298_v5 }
  0x4c   :  { %vm309_vm12 = vcmp.gt.s32.totalorder %v308_v13, 0  ;;  %v1303_v29 = vmul.f32 6.2831855, %v43_v20  ;;  %v65_v35 = vand.u32 2147483648, %v1267_v32  ;;  %v72_v38 = vand.u32 2147483648, %v1272_v37 }
  0x4d   :  { %v158_v12 = vsub.s32 0, %v156_v6  ;;  %vm252_vm11 = vc.u32 %v1296_v10, %v1290_v2  ;;  %v310_v28 = vsel %vm309_vm12, %v308_v13, 0  ;;  %v306_v31 = vor.u32 8388608, %v305_v19 }
  0x4e   :  { %v254_v26 = vsel %vm252_vm11, %v253_v16, %v1291_v4  ;;  %v312_v33 = vand.u32 31, %v310_v28  ;;  %v401_v40 = vand.u32 2147483647, %v1303_v29  ;;  %v148_v42 = vadd.s32 %v1251_v9, %v1256_v14 }
  0x4f   :  { %v1001_v22 = vmin.u32 %v158_v12, %v156_v6  ;;  %v1064_v21 = vpop.eup %1063  ;;  %v255_v30 = vadd.s32 %v254_v26, %v250_v15  ;;  %v178_v47 = vsub.s32 4, %v1279_v54  ;;  %v1317_v50 = vmul.f32 0.6931472, %v1062_v44 }
  0x50   :  { %v1066_v24 = vpop.eup %1065  ;;  %v1309_v41 = vmul.f32 %v1064_v21, %v1267_v32  ;;  %v313_v45 = vsub.s32 32, %v312_v33  ;;  %v315_v53 = vshll.u32 %v1163_v23, %v312_v33  ;;  %v1322_v55 = vshll.u32 %v306_v31, 8 }
  0x51   :  { %v160_v17 = vclz %v1001_v22  ;;  %v256_v43 = vadd.s32 536870912, %v255_v30  ;;  %v1315_v48 = vmul.f32 %v1066_v24, %v1272_v37  ;;  %v311_v59 = vshrl.u32 %v310_v28, 5 }
  0x52   :  { %v316_v14 = vshrl.u32 %v1164_v25, %v313_v45  ;;  %v318_v60 = vshll.u32 %v1164_v25, %v312_v33  ;;  %v319_v44 = vshrl.u32 %v1165_v27, %v313_v45  ;;  %v321_v63 = vshll.u32 %v1165_v27, %v312_v33 }
  0x53   :  { %v1002_v36 = vadd.s32 4294967294, %v160_v17  ;;  %v1319_v52 = vshrl.u32 %v256_v43, 30  ;;  %v322_v0 = vshrl.u32 %v1166_v34, %v313_v45  ;;  %v1332_v4 = vadd.s32 %v1290_v2, %v1296_v10 }
  0x54   :  { %v324_v7 = vshll.u32 %v1166_v34, %v312_v33  ;;  %v327_v8 = vshll.u32 %v1167_v39, %v312_v33  ;;  %v314_v16 = vshrl.u32 %v1163_v23, %v313_v45  ;;  %v317_v19 = vor.u32 %v316_v14, %v315_v53 }
  0x55   :  { %vm1003_vm13 = vcmp.lt.s32.totalorder %v1002_v36, 0  ;;  %v258_v58 = vshll.u32 %v1319_v52, 30  ;;  %v320_v10 = vor.u32 %v319_v44, %v318_v60  ;;  %v325_v20 = vshrl.u32 %v1167_v39, %v313_v45 }
  0x56   :  { %v163_v51 = vsel %vm1003_vm13, 0, %v1002_v36  ;;  %v328_v22 = vshrl.u32 %v1168_v46, %v313_v45  ;;  %v323_v17 = vor.u32 %v322_v0, %v321_v63  ;;  %vm330_vm0 = vcmp.lt.s32.totalorder %v311_v59, 1 }
  0x57   :  { %v164_v56 = vsub.s32 32, %v163_v51  ;;  %v165_v57 = vshll.u32 %v156_v6, %v163_v51  ;;  %v168_v9 = vsub.s32 4294967266, %v163_v51  ;;  %v1334_v6 = vsub.s32 %v255_v30, %v258_v58 }
  0x58   :  { %vm62_vm1 = vcmp.eq.f32.partialorder %v1267_v32, inf  ;;  %v281_v26 = vsub.s32 4, %v1319_v52  ;;  %vm331_vm2 = vcmp.lt.s32.totalorder %v311_v59, 2  ;;  %v404_v28 = vand.u32 2139095040, %v1303_v29 }
  0x59   :  { %v166_v61 = vshrl.u32 %v148_v42, %v164_v56  ;;  %v169_v62 = vadd.s32 127, %v168_v9  ;;  %v261_v2 = vsub.s32 0, %v1334_v6  ;;  %vm69_vm3 = vcmp.eq.f32.partialorder %v1272_v37, inf }
  0x5a   :  { %v326_v31 = vor.u32 %v325_v20, %v324_v7  ;;  %v329_v33 = vor.u32 %v328_v22, %v327_v8  ;;  %vm332_vm4 = vcmp.lt.s32.totalorder %v311_v59, 3  ;;  %vm197_vm5 = vcmp.lt.s32.totalorder %v1211_v3, 0 }
  0x5b   :  { %v167_v13 = vor.u32 %v166_v61, %v165_v57  ;;  %v170_v15 = vshll.u32 %v169_v62, 23  ;;  %v1005_v11 = vmin.u32 %v261_v2, %v1334_v6  ;;  %vm333_vm6 = vcmp.lt.s32.totalorder %v311_v59, 4 }
  0x5c   :  { %v334_v42 = vsel %vm330_vm0, %v314_v16, %v317_v19  ;;  %v338_v43 = vsel %vm330_vm0, %v317_v19, %v320_v10  ;;  %v335_v51 = vsel %vm333_vm6, %v323_v17, 2102212464  ;;  %v339_v53 = vsel %vm333_vm6, %v326_v31, 920167782 }
  0x5d   :  { %v171_v21 = vor.u32 4788187, %v170_v15  ;;  %v174_v24 = vcvt.s32.f32 %v167_v13  ;;  %v263_v36 = vclz %v1005_v11  ;;  %v342_v56 = vsel %vm330_vm0, %v320_v10, %v323_v17 }
  0x5e   :  { %vm64_vm7 = vcmp.eq.f32.partialorder %v1267_v32, 0.0  ;;  %vm71_vm8 = vcmp.eq.f32.partialorder %v1272_v37, 0.0  ;;  %v336_v9 = vsel %vm332_vm4, %v320_v10, %v335_v51  ;;  %v340_v14 = vsel %vm332_vm4, %v323_v17, %v339_v53 }
  0x5f   :  { %v172_v30 = vand.u32 2147483647, %v171_v21  ;;  %v1006_v57 = vadd.s32 4294967294, %v263_v36  ;;  %v343_v58 = vsel %vm333_vm6, %v329_v33, 1326507024  ;;  %v337_v61 = vsel %vm331_vm2, %v334_v42, %v336_v9 }
  0x60   :  { %vm1363_vm9 = vcmp.le.f32.partialorder %v195_v18, 0.7853982  ;;  %v341_v62 = vsel %vm331_vm2, %v338_v43, %v340_v14  ;;  %v344_v63 = vsel %vm332_vm4, %v326_v31, %v343_v58  ;;  %v179_v20 = vsel %vm94_vm14, %v178_v47, %v1279_v54 }
  0x61   :  { %v175_v45 = vmul.f32 %v174_v24, %v172_v30  ;;  %vm1007_vm10 = vcmp.lt.s32.totalorder %v1006_v57, 0  ;;  %v345_v0 = vsel %vm331_vm2, %v342_v56, %v344_v63  ;;  %v353_v22 = vmul.u32 %v1322_v55, %v337_v61 }
  0x62   :  { %v1372_v7 = vmul.u32.u64.low %v1322_v55, %v341_v62  ;;  %v1373_v8 = vmul.u32.u64.high %v1322_v55, %v341_v62, %v1372_v7  ;;  %v266_v18 = vsel %vm1007_vm10, 0, %v1006_v57  ;;  %v405_v21 = vshrl.u32 %v404_v28, 23 }
  0x63   :  { %v176_v60 = vxor.u32 2147483648, %v175_v45  ;;  %v1378_v15 = vmul.u32.u64.low %v1322_v55, %v345_v0  ;;  %v1379_v16 = vmul.u32.u64.high %v1322_v55, %v345_v0, %v1378_v15  ;;  %v267_v2 = vsub.s32 32, %v266_v18 }
  0x64   :  { %v268_v59 = vshll.u32 %v1334_v6, %v266_v18  ;;  %v271_v10 = vsub.s32 4294967266, %v266_v18  ;;  %v356_v11 = vadd.s32 1, %v1373_v8  ;;  %v63_v6 = vsel %vm62_vm1, %v1267_v32, %v1309_v41 }
  0x65   :  { %v177_v13 = vsel %vm94_vm14, %v176_v60, %v175_v45  ;;  %v269_v24 = vshrl.u32 %v1332_v4, %v267_v2  ;;  %v282_v30 = vsel %vm197_vm5, %v281_v26, %v1319_v52  ;;  %vm355_vm11 = vc.u32 %v1379_v16, %v1372_v7 }
  0x66   :  { %v180_v19 = vsel %vm1340_vm15, %v1209_v1, %v177_v13  ;;  %v272_v17 = vadd.s32 127, %v271_v10  ;;  %v1012_v54 = vadd.s32 4294967169, %v405_v21  ;;  %v70_v47 = vsel %vm69_vm3, %v1272_v37, %v1315_v48 }
  0x67   :  { %1067 = vcosq.f32 %v180_v19  ;;  %v270_v55 = vor.u32 %v269_v24, %v268_v59  ;;  %v357_v28 = vsel %vm355_vm11, %v356_v11, %v1373_v8  ;;  %v181_v31 = vsel %vm1340_vm15, 0, %v179_v20 }
  0x68   :  { %1069 = vsinq.f32 %v180_v19  ;;  %v273_v4 = vshll.u32 %v272_v17, 23  ;;  %v1409_v41 = vmul.f32 -2.0, %v1317_v50  ;;  %v358_v33 = vadd.s32 %v357_v28, %v353_v22  ;;  %v928_v28 = vld [vmem:[#allocation2] sm:$0xff] }
  0x69   :  { %v411_v52 = vadd.s32 1, %v1012_v54  ;;  %vm184_vm12 = vweird.f32 %v1209_v1  ;;  %v185_v26 = vand.u32 3, %v181_v31  ;;  %v277_v42 = vcvt.s32.f32 %v270_v55 }
  0x6a   :  { %v274_v36 = vor.u32 4788187, %v273_v4  ;;  %v284_v48 = vsel %vm1363_vm9, 0, %v282_v30  ;;  %v1418_v43 = vsel %vm64_vm7, %v65_v35, %v63_v6  ;;  %v1424_v50 = vsel %vm71_vm8, %v72_v38, %v70_v47 }
  0x6b   :  { %v359_v12 = vadd.s32 536870912, %v358_v33  ;;  %vm412_vm13 = vcmp.gt.s32.totalorder %v411_v52, 0  ;;  %v408_v51 = vand.u32 8388607, %v401_v40  ;;  %v601_v56 = vadd.s32 3, %v181_v31 }
  0x6c   :  { %v275_v45 = vand.u32 2147483647, %v274_v36  ;;  %v413_v53 = vsel %vm412_vm13, %v411_v52, 0  ;;  %1071 = vrsqrt.f32 %v1409_v41  ;;  %v705_v35 = vadd.s32 3, %v284_v48 }
  0x6d   :  { %v1429_v57 = vshrl.u32 %v359_v12, 30  ;;  %v415_v32 = vand.u32 31, %v413_v53  ;;  %vm186_vm14 = vcmp.lt.s32.totalorder %v185_v26, 2  ;;  %vm187_vm15 = vcmp.eq.s32.totalorder %v185_v26, 0 }
  0x6e   :  { %vm190_vm0 = vcmp.eq.s32.totalorder %v185_v26, 2  ;;  %v278_v37 = vmul.f32 %v277_v42, %v275_v45  ;;  %v1433_v9 = vand.u32 3, %v284_v48  ;;  %v1436_v14 = vadd.s32 %v1372_v7, %v1379_v16 }
  0x6f   :  { %v361_v58 = vshll.u32 %v1429_v57, 30  ;;  %v416_v60 = vsub.s32 32, %v415_v32  ;;  %v409_v0 = vor.u32 8388608, %v408_v51  ;;  %v1442_v8 = vand.u32 3, %v601_v56 }
  0x70   :  { %v279_v63 = vxor.u32 2147483648, %v278_v37  ;;  %v418_v15 = vshll.u32 %v1163_v23, %v415_v32  ;;  %v1448_v19 = vand.u32 3, %v705_v35  ;;  %v421_v59 = vshll.u32 %v1164_v25, %v415_v32 }
  0x71   :  { %v1431_v38 = vpop.eup %1067  ;;  %v1445_v18 = vsub.s32 %v358_v33, %v361_v58  ;;  %v419_v2 = vshrl.u32 %v1164_v25, %v416_v60  ;;  %v1466_v21 = vshrl.u32 %v413_v53, 5  ;;  %v422_v17 = vshrl.u32 %v1165_v27, %v416_v60 }
  0x72   :  { %v1439_v61 = vpop.eup %1069  ;;  %v191_v62 = vxor.u32 2147483648, %v1431_v38  ;;  %v280_v16 = vsel %vm197_vm5, %v279_v63, %v278_v37  ;;  %v1470_v11 = vshll.u32 %v409_v0, 8  ;;  %v424_v44 = vshll.u32 %v1165_v27, %v415_v32 }
  0x73   :  { %v188_v13 = vxor.u32 2147483648, %v1439_v61  ;;  %v283_v20 = vsel %vm1363_vm9, %v1211_v3, %v280_v16  ;;  %v364_v22 = vsub.s32 0, %v1445_v18  ;;  %vm293_vm1 = vcmp.eq.s32.totalorder %v1433_v9, 2 }
  0x74   :  { %v192_v7 = vsel %vm190_vm0, %v191_v62, %v1439_v61  ;;  %1073 = vcosq.f32 %v283_v20  ;;  %v417_v54 = vshrl.u32 %v1163_v23, %v416_v60  ;;  %v420_v47 = vor.u32 %v419_v2, %v418_v15 }
  0x75   :  { %v189_v10 = vsel %vm187_vm15, %v1431_v38, %v188_v13  ;;  %1075 = vsinq.f32 %v283_v20  ;;  %v1009_v6 = vmin.u32 %v364_v22, %v1445_v18  ;;  %v423_v55 = vor.u32 %v422_v17, %v421_v59 }
  0x76   :  { %v193_v24 = vsel %vm186_vm14, %v189_v10, %v192_v7  ;;  %v1479_v4 = vpop.eup %1071  ;;  %vm290_vm2 = vcmp.eq.s32.totalorder %v1433_v9, 0  ;;  %v425_v33 = vshrl.u32 %v1166_v34, %v416_v60  ;;  %v427_v52 = vshll.u32 %v1166_v34, %v415_v32 }
  0x77   :  { %v194_v25 = vsel %vm184_vm12, nan, %v193_v24  ;;  %v366_v31 = vclz %v1009_v6  ;;  %v428_v27 = vshrl.u32 %v1167_v39, %v416_v60  ;;  %vm289_vm3 = vcmp.lt.s32.totalorder %v1433_v9, 2 }
  0x78   :  { %v504_v30 = vmul.f32 %v194_v25, %v1418_v43  ;;  %v430_v36 = vshll.u32 %v1167_v39, %v415_v32  ;;  %v431_v23 = vshrl.u32 %v1168_v46, %v416_v60  ;;  %vm433_vm4 = vcmp.lt.s32.totalorder %v1466_v21, 1 }
  0x79   :  { %vm604_vm5 = vcmp.eq.s32.totalorder %v1442_v8, 0  ;;  %vm287_vm6 = vweird.f32 %v1211_v3  ;;  %v1010_v42 = vadd.s32 4294967294, %v366_v31  ;;  %v426_v48 = vor.u32 %v425_v33, %v424_v44 }
  0x7a   :  { %v932_v26 = vmul.f32 0.01, %v504_v30  ;;  %v429_v12 = vor.u32 %v428_v27, %v427_v52  ;;  %vm434_vm7 = vcmp.lt.s32.totalorder %v1466_v21, 2  ;;  %vm607_vm8 = vcmp.eq.s32.totalorder %v1442_v8, 2 }
  0x7b   :  { %v432_v45 = vor.u32 %v431_v23, %v430_v36  ;;  %vm435_vm9 = vcmp.lt.s32.totalorder %v1466_v21, 3  ;;  %vm436_vm10 = vcmp.lt.s32.totalorder %v1466_v21, 4  ;;  %vm603_vm11 = vcmp.lt.s32.totalorder %v1442_v8, 2 }
  0x7c   :  { %v936_v34 = vadd.f32 %v932_v26, %v928_v28  ;;  %vm1011_vm13 = vcmp.lt.s32.totalorder %v1010_v42, 0  ;;  %v437_v39 = vsel %vm433_vm4, %v417_v54, %v420_v47  ;;  %v438_v46 = vsel %vm436_vm10, %v426_v48, 2102212464 }
  0x7d   :  { %v441_v51 = vsel %vm433_vm4, %v420_v47, %v423_v55  ;;  %v369_v56 = vsel %vm1011_vm13, 0, %v1010_v42  ;;  %v439_v32 = vsel %vm435_vm9, %v423_v55, %v438_v46  ;;  %v442_v35 = vsel %vm436_vm10, %v429_v12, 920167782 }
  0x7e   :  { %v944_v53 = vmax.f32 %v936_v34, 0.0  ;;  %v370_v37 = vsub.s32 32, %v369_v56  ;;  %v371_v58 = vshll.u32 %v1445_v18, %v369_v56  ;;  %v374_v60 = vsub.s32 4294967266, %v369_v56  ;;  %v1074_v0 = vpop.eup %1073 }
  0x7f   :  { %v440_v63 = vsel %vm434_vm7, %v437_v39, %v439_v32  ;;  %v443_v7 = vsel %vm435_vm9, %v426_v48, %v442_v35  ;;  %v445_v16 = vsel %vm433_vm4, %v423_v55, %v426_v48  ;;  %v446_v2 = vsel %vm436_vm10, %v432_v45, 1326507024  ;;  %v1076_v59 = vpop.eup %1075 }
  0x80   :  { %v948_v15 = vmin.f32 %v944_v53, 1.0  ;;  %v294_v10 = vxor.u32 2147483648, %v1074_v0  ;;  %vm300_vm14 = vcmp.lt.s32.totalorder %v1235_v49, 0  ;;  %v372_v18 = vshrl.u32 %v1436_v14, %v370_v37 }
  0x81   :  { %v375_v20 = vadd.s32 127, %v374_v60  ;;  %v444_v22 = vsel %vm434_vm7, %v441_v51, %v443_v7  ;;  %v291_v24 = vxor.u32 2147483648, %v1076_v59  ;;  %v447_v17 = vsel %vm435_vm9, %v429_v12, %v446_v2  ;;  %v956_v51 = vld [vmem:[#allocation2 + $0x20] sm:$0xff] }
  0x82   :  { %952 = vst [vmem:[#allocation7] sm:$0xff] %v948_v15  ;;  %v1522_v25 = vmul.u32.u64.low %v1470_v11, %v444_v22  ;;  %v1523_v6 = vmul.u32.u64.high %v1470_v11, %v444_v22, %v1522_v25  ;;  %v295_v44 = vsel %vm293_vm1, %v294_v10, %v1076_v59  ;;  %v373_v30 = vor.u32 %v372_v18, %v371_v58 }
  0x83   :  { %v376_v54 = vshll.u32 %v375_v20, 23  ;;  %v448_v14 = vsel %vm434_vm7, %v445_v16, %v447_v17  ;;  %v292_v47 = vsel %vm290_vm2, %v1074_v0, %v291_v24  ;;  %v384_v55 = vsub.s32 4, %v1429_v57 }
  0x84   :  { %v1534_v28 = vmul.u32.u64.low %v1470_v11, %v448_v14  ;;  %v1535_v31 = vmul.u32.u64.high %v1470_v11, %v448_v14, %v1534_v28  ;;  %v296_v33 = vsel %vm289_vm3, %v292_v47, %v295_v44  ;;  %v380_v27 = vcvt.s32.f32 %v373_v30 }
  0x85   :  { %v377_v52 = vor.u32 4788187, %v376_v54  ;;  %v606_v21 = vsel %vm604_vm5, %v1431_v38, %v188_v13  ;;  %v297_v26 = vsel %vm287_vm6, nan, %v296_v33  ;;  %v456_v36 = vmul.u32 %v1470_v11, %v440_v63  ;;  %v929_v13 = vld [vmem:[#allocation2 + $0x8] sm:$0xff] }
  0x86   :  { %v459_v23 = vadd.s32 1, %v1523_v6  ;;  %v609_v9 = vsel %vm607_vm8, %v191_v62, %v1439_v61  ;;  %v505_v42 = vmul.f32 %v297_v26, %v1424_v50  ;;  %vm708_vm15 = vcmp.eq.s32.totalorder %v1448_v19, 0  ;;  %v39_v62 = vld [vmem:[#allocation5 + $0x18] sm:$0xff] }
  0x87   :  { %v378_v48 = vand.u32 2147483647, %v377_v52  ;;  %v610_v12 = vsel %vm603_vm11, %v606_v21, %v609_v9  ;;  %vm458_vm0 = vc.u32 %v1535_v31, %v1522_v25  ;;  %vm707_vm1 = vcmp.lt.s32.totalorder %v1448_v19, 2 }
  0x88   :  { %v611_v11 = vsel %vm184_vm12, nan, %v610_v12  ;;  %v710_v38 = vsel %vm708_vm15, %v1074_v0, %v291_v24  ;;  %v933_v34 = vmul.f32 0.01, %v505_v42  ;;  %v460_v45 = vsel %vm458_vm0, %v459_v23, %v1523_v6 }
  0x89   :  { %v381_v61 = vmul.f32 %v380_v27, %v378_v48  ;;  %v924_v8 = vmul.f32 %v611_v11, %v1418_v43  ;;  %vm1566_vm2 = vcmp.le.f32.partialorder %v298_v5, 0.7853982  ;;  %v385_v1 = vsel %vm300_vm14, %v384_v55, %v1429_v57 }
  0x8a   :  { %v461_v46 = vadd.s32 %v460_v45, %v456_v36  ;;  %vm711_vm12 = vcmp.eq.s32.totalorder %v1448_v19, 2  ;;  %v937_v53 = vadd.f32 %v933_v34, %v929_v13  ;;  %v47_v37 = vsub.f32 1.0, %v39_v62 }
  0x8b   :  { %v382_v56 = vxor.u32 2147483648, %v381_v61  ;;  %v960_v32 = vmul.f32 0.01, %v924_v8  ;;  %v713_v35 = vsel %vm711_vm12, %v294_v10, %v1076_v59  ;;  %v387_v15 = vsel %vm1566_vm2, 0, %v385_v1  ;;  %v957_v59 = vld [vmem:[#allocation2 + $0x28] sm:$0xff] }
  0x8c   :  { %v462_v43 = vadd.s32 536870912, %v461_v46  ;;  %v714_v5 = vsel %vm707_vm1, %v710_v38, %v713_v35  ;;  %v945_v58 = vmax.f32 %v937_v53, 0.0  ;;  %v809_v20 = vadd.s32 3, %v387_v15 }
  0x8d   :  { %v383_v60 = vsel %vm300_vm14, %v382_v56, %v381_v61  ;;  %v964_v63 = vadd.f32 %v960_v32, %v956_v51  ;;  %v715_v57 = vsel %vm287_vm6, nan, %v714_v5  ;;  %v391_v44 = vand.u32 3, %v387_v15  ;;  %v958_v32 = vld [vmem:[#allocation2 + $0x30] sm:$0xff] }
  0x8e   :  { %v386_v0 = vsel %vm1566_vm2, %v1235_v49, %v383_v60  ;;  %v1585_v7 = vshrl.u32 %v462_v43, 30  ;;  %v925_v19 = vmul.f32 %v715_v57, %v1424_v50  ;;  %v949_v16 = vmin.f32 %v945_v58, 1.0 }
  0x8f   :  { %1077 = vcosq.f32 %v386_v0  ;;  %v972_v2 = vmax.f32 %v964_v63, 0.0  ;;  %v75_v50 = vmul.f32 %v1479_v4, %v1409_v41  ;;  %v810_v30 = vand.u32 3, %v809_v20 }
  0x90   :  { %1079 = vsinq.f32 %v386_v0  ;;  %v464_v10 = vshll.u32 %v1585_v7, 30  ;;  %v961_v3 = vmul.f32 0.01, %v925_v19  ;;  %953 = vst [vmem:[#allocation7 + $0x8] sm:$0xff] %v949_v16  ;;  %vm76_vm3 = vcmp.eq.f32.partialorder %v1409_v41, inf }
  0x91   :  { %v976_v18 = vmin.f32 %v972_v2, 1.0  ;;  %1081 = vlog2.f32 %v47_v37  ;;  %vm78_vm4 = vcmp.eq.f32.partialorder %v1409_v41, 0.0  ;;  %v77_v28 = vsel %vm76_vm3, %v1409_v41, %v75_v50 }
  0x92   :  { %v465_v22 = vsub.s32 %v461_v46, %v464_v10  ;;  %v965_v24 = vadd.f32 %v961_v3, %v957_v59  ;;  %v79_v33 = vand.u32 2147483648, %v1409_v41  ;;  %vm396_vm5 = vcmp.eq.s32.totalorder %v391_v44, 2  ;;  %v930_v41 = vld [vmem:[#allocation2 + $0x10] sm:$0xff] }
  0x93   :  { %980 = vst [vmem:[#allocation7 + $0x20] sm:$0xff] %v976_v18  ;;  %vm815_vm6 = vcmp.eq.s32.totalorder %v810_v30, 2  ;;  %vm393_vm7 = vcmp.eq.s32.totalorder %v391_v44, 0  ;;  %vm812_vm8 = vcmp.eq.s32.totalorder %v810_v30, 0  ;;  %vm390_vm9 = vweird.f32 %v1235_v49 }
  0x94   :  { %v467_v17 = vsub.s32 0, %v465_v22  ;;  %v973_v6 = vmax.f32 %v965_v24, 0.0  ;;  %vm392_vm10 = vcmp.lt.s32.totalorder %v391_v44, 2  ;;  %v457_v26 = vadd.s32 %v1522_v25, %v1535_v31 }
  0x95   :  { %vm811_vm13 = vcmp.lt.s32.totalorder %v810_v30, 2  ;;  %v80_v42 = vsel %vm78_vm4, %v79_v33, %v77_v28  ;;  %v487_v0 = vsub.s32 4, %v1585_v7  ;;  %vm403_vm14 = vcmp.lt.s32.totalorder %v1303_v29, 0 }
  0x96   :  { %v1013_v54 = vmin.u32 %v467_v17, %v465_v22  ;;  %v977_v14 = vmin.f32 %v973_v6, 1.0  ;;  %vm402_vm15 = vcmp.le.f32.partialorder %v401_v40, 0.7853982 }
  0x97   :  { %v488_v59 = vsel %vm403_vm14, %v487_v0, %v1585_v7 }
  0x98   :  { %v469_v47 = vclz %v1013_v54  ;;  %981 = vst [vmem:[#allocation7 + $0x28] sm:$0xff] %v977_v14  ;;  %v490_v18 = vsel %vm402_vm15, 0, %v488_v59 }
  0x99   :  { %v1078_v55 = vpop.eup %1077  ;;  %v913_v20 = vadd.s32 3, %v490_v18  ;;  %v494_v24 = vand.u32 3, %v490_v18 }
  0x9a   :  { %v1080_v52 = vpop.eup %1079  ;;  %v397_v4 = vxor.u32 2147483648, %v1078_v55  ;;  %v1014_v27 = vadd.s32 4294967294, %v469_v47 }
  0x9b   :  { %v394_v21 = vxor.u32 2147483648, %v1080_v52  ;;  %v1082_v36 = vpop.eup %1081  ;;  %v914_v17 = vand.u32 3, %v913_v20  ;;  %vm499_vm2 = vcmp.eq.s32.totalorder %v494_v24, 2  ;;  %vm496_vm3 = vcmp.eq.s32.totalorder %v494_v24, 0 }
  0x9c   :  { %v398_v23 = vsel %vm396_vm5, %v397_v4, %v1080_v52  ;;  %vm1015_vm11 = vcmp.lt.s32.totalorder %v1014_v27, 0  ;;  %v817_v9 = vsel %vm815_vm6, %v397_v4, %v1080_v52  ;;  %v55_v45 = vmul.f32 0.6931472, %v1082_v36 }
  0x9d   :  { %v395_v48 = vsel %vm393_vm7, %v1078_v55, %v394_v21  ;;  %v472_v12 = vsel %vm1015_vm11, 0, %v1014_v27  ;;  %v814_v13 = vsel %vm812_vm8, %v1078_v55, %v394_v21  ;;  %vm919_vm12 = vcmp.eq.s32.totalorder %v914_v17, 2 }
  0x9e   :  { %v399_v11 = vsel %vm392_vm10, %v395_v48, %v398_v23  ;;  %v473_v38 = vsub.s32 32, %v472_v12  ;;  %v474_v34 = vshll.u32 %v465_v22, %v472_v12  ;;  %v477_v61 = vsub.s32 4294967266, %v472_v12  ;;  %v931_v23 = vld [vmem:[#allocation2 + $0x18] sm:$0xff] }
  0x9f   :  { %v400_v62 = vsel %vm390_vm9, nan, %v399_v11  ;;  %v818_v25 = vsel %vm811_vm13, %v814_v13, %v817_v9  ;;  %v59_v43 = vmul.f32 -2.0, %v55_v45  ;;  %vm916_vm4 = vcmp.eq.s32.totalorder %v914_v17, 0  ;;  %v959_v9 = vld [vmem:[#allocation2 + $0x38] sm:$0xff] }
  0xa0   :  { %v506_v31 = vmul.f32 %v400_v62, %v80_v42  ;;  %v475_v8 = vshrl.u32 %v457_v26, %v473_v38  ;;  %v478_v39 = vadd.s32 127, %v477_v61  ;;  %v819_v1 = vsel %vm390_vm9, nan, %v818_v25 }
  0xa1   :  { %v926_v46 = vmul.f32 %v819_v1, %v80_v42  ;;  %1083 = vrsqrt.f32 %v59_v43  ;;  %vm83_vm0 = vcmp.eq.f32.partialorder %v59_v43, inf  ;;  %vm85_vm1 = vcmp.eq.f32.partialorder %v59_v43, 0.0 }
  0xa2   :  { %v934_v51 = vmul.f32 0.01, %v506_v31  ;;  %v476_v53 = vor.u32 %v475_v8, %v474_v34  ;;  %v479_v56 = vshll.u32 %v478_v39, 23  ;;  %v86_v44 = vand.u32 2147483648, %v59_v43 }
  0xa3   :  { %v962_v35 = vmul.f32 0.01, %v926_v46  ;;  %vm495_vm5 = vcmp.lt.s32.totalorder %v494_v24, 2  ;;  %vm915_vm6 = vcmp.lt.s32.totalorder %v914_v17, 2  ;;  %vm493_vm7 = vweird.f32 %v1303_v29 }
  0xa4   :  { %v938_v37 = vadd.f32 %v934_v51, %v930_v41  ;;  %v480_v5 = vor.u32 4788187, %v479_v56  ;;  %v483_v58 = vcvt.s32.f32 %v476_v53 }
  0xa5   :  { %v966_v60 = vadd.f32 %v962_v35, %v958_v32 }
  0xa6   :  { %v946_v63 = vmax.f32 %v938_v37, 0.0  ;;  %v481_v57 = vand.u32 2147483647, %v480_v5 }
  0xa7   :  { %v974_v15 = vmax.f32 %v966_v60, 0.0 }
  0xa8   :  { %v950_v19 = vmin.f32 %v946_v63, 1.0  ;;  %v484_v49 = vmul.f32 %v483_v58, %v481_v57 }
  0xa9   :  { %v978_v16 = vmin.f32 %v974_v15, 1.0 }
  0xaa   :  { %954 = vst [vmem:[#allocation7 + $0x10] sm:$0xff] %v950_v19  ;;  %v485_v2 = vxor.u32 2147483648, %v484_v49 }
  0xab   :  { %982 = vst [vmem:[#allocation7 + $0x30] sm:$0xff] %v978_v16  ;;  %v1084_v22 = vpop.eup %1083 }
  0xac   :  { %v486_v10 = vsel %vm403_vm14, %v485_v2, %v484_v49  ;;  %v82_v6 = vmul.f32 %v1084_v22, %v59_v43 }
  0xad   :  { %v489_v3 = vsel %vm402_vm15, %v1303_v29, %v486_v10 }
  0xae   :  { %1085 = vcosq.f32 %v489_v3  ;;  %v84_v7 = vsel %vm83_vm0, %v59_v43, %v82_v6 }
  0xaf   :  { %1087 = vsinq.f32 %v489_v3  ;;  %v87_v55 = vsel %vm85_vm1, %v86_v44, %v84_v7 }
  0xb8   :  { %v1086_v50 = vpop.eup %1085 }
  0xb9   :  { %v1088_v40 = vpop.eup %1087  ;;  %v500_v30 = vxor.u32 2147483648, %v1086_v50 }
  0xba   :  { %v497_v54 = vxor.u32 2147483648, %v1088_v40 }
  0xbb   :  { %v501_v14 = vsel %vm499_vm2, %v500_v30, %v1088_v40  ;;  %v921_v47 = vsel %vm919_vm12, %v500_v30, %v1088_v40 }
  0xbc   :  { %v498_v28 = vsel %vm496_vm3, %v1086_v50, %v497_v54  ;;  %v918_v33 = vsel %vm916_vm4, %v1086_v50, %v497_v54 }
  0xbd   :  { %v502_v52 = vsel %vm495_vm5, %v498_v28, %v501_v14  ;;  %v922_v4 = vsel %vm915_vm6, %v918_v33, %v921_v47 }
  0xbe   :  { %v503_v27 = vsel %vm493_vm7, nan, %v502_v52  ;;  %v923_v21 = vsel %vm493_vm7, nan, %v922_v4 }
  0xbf   :  { %v507_v26 = vmul.f32 %v503_v27, %v87_v55  ;;  %v927_v36 = vmul.f32 %v923_v21, %v87_v55 }
  0xc1   :  { %v935_v42 = vmul.f32 0.01, %v507_v26  ;;  %v963_v48 = vmul.f32 0.01, %v927_v36 }
  0xc3   :  { %v939_v12 = vadd.f32 %v935_v42, %v931_v23  ;;  %v967_v13 = vadd.f32 %v963_v48, %v959_v9 }
  0xc5   :  { %v947_v29 = vmax.f32 %v939_v12, 0.0  ;;  %v975_v11 = vmax.f32 %v967_v13, 0.0 }
  0xc7   :  { %v951_v38 = vmin.f32 %v947_v29, 1.0  ;;  %v979_v34 = vmin.f32 %v975_v11, 1.0 }
  0xc9   :  { %955 = vst [vmem:[#allocation7 + $0x18] sm:$0xff] %v951_v38  ;;  %983 = vst [vmem:[#allocation7 + $0x38] sm:$0xff] %v979_v34 }
  0xca   :  { %1144 = shalt.err (!%p1141_p6)
}
  0xcb   :  { %s1145_s8 = scalar_lea.hbm %s1625_s2, 1024 }
  0xcc   :  { %p1146_p7 = scmp.ne.s32.totalorder %s1625_s2, %s1145_s8  ;;  %p1149_p8 = scmp.lt.u32.totalorder %s1145_s8, %s1625_s2 }
  0xce   :  { %p1151_p9 = pnand %p1149_p8, %p1146_p7 }
  0xd0   :  { %1154 = shalt.err (!%p1151_p9)
}
  0xd1   :  { %993 = dma.vmem_to_hbm [thread:$0]  %s991_s4, 1024, %s1625_s2, [#allocation4]  }
  0xd2   :  { %1159 = dma.done.wait [#allocation4], 1024  }
  0xd3   :  { %1160 = vsyncadd [#allocation4], 4294966272 }
  0xd4   :  { %997 = vsyncpa [#allocation3], 1 }
  0xd5   :  { %998 = vsyncpa [#allocation6], 1 }
  0xd6   :  { %999 = vsyncpa [#allocation4], 1 }

</bundles_post_ra>
